<compile_context>
chip_gen: v5e
topology: v5e:2x2
jax: 0.10.0
libtpu: 0.0.40
codegen_flags: <defaults>
</compile_context>

<pallas_src>
import jax
import jax.numpy as jnp
from jax.experimental import pallas as pl
from jax.experimental.pallas import tpu as pltpu

NEG_SLOPE = 0.01  # torch.nn.LeakyReLU default


# ----------------------------------------------------------------------------
# small helpers
# ----------------------------------------------------------------------------
def _leaky_relu(v):
    # max(v, a*v) == leaky_relu(v) for 0 < a < 1; saves a compare+select.
    return jnp.maximum(v, NEG_SLOPE * v)


def _round_up(n, m):
    return ((n + m - 1) // m) * m


def _tpu_vmem_bytes():
    """Physical per-core VMEM; conservative 64 MiB (v7x) if detection fails."""
    try:
        v = int(getattr(pltpu.get_tpu_info(), "vmem_capacity_bytes"))
        if v > 0:
            return v
    except Exception:
        pass
    return 64 * 1024 * 1024


def _largest_divisor_tile(cp):
    for c in (512, 384, 256, 128):
        if cp % c == 0:
            return c
    return 128


def _choose_tm(M, C, dsize, vmem_limit, row_align, n_cores):
    """Largest sublane-aligned row tile that fits the weight-resident fast path.

    Budget: 1x (C,C) weight (single-buffered) + double-buffered x and out tiles
    + bias + headroom  <=  vmem_limit.  Returns None if the fast path can't fit.
    """
    w_bytes = C * C * dsize                 # single-buffered, grid-invariant
    b_bytes = max(C, 128) * 4               # f32 bias row
    slack = 2 * 1024 * 1024                 # compiler-internal scratch headroom
    avail = vmem_limit - w_bytes - b_bytes - slack
    if avail <= 0:
        return None
    per_row = 4 * C * dsize                 # x (2 bufs) + out (2 bufs)
    tm_max = avail // per_row
    if tm_max < row_align:
        return None
    tm = min(int(tm_max), 4096, _round_up(M, row_align))
    if n_cores > 1 and M > row_align:
        # ensure the "parallel" row axis has >= n_cores steps (v7x: 2 TCs)
        tm = min(tm, _round_up((M + n_cores - 1) // n_cores, row_align))
    tm = max(row_align, (tm // row_align) * row_align)
    return int(tm)


# ----------------------------------------------------------------------------
# kernels
# ----------------------------------------------------------------------------
def reslayer_kernel(x_ref, w_ref, b_ref, o_ref):
    # Fast path: whole (C, C) weight VMEM-resident, one row tile per grid step.
    # x_ref: (tm, C) input dtype (bf16 goes straight into the MXU)
    # w_ref: (C, C)  pre-transposed to [in, out] outside the kernel
    # b_ref: (1, C)  f32
    x = x_ref[...]
    y = jnp.dot(x, w_ref[...], preferred_element_type=jnp.float32)
    y = _leaky_relu(y + b_ref[...])          # bias + first LeakyReLU in f32
    y = y.astype(o_ref.dtype)                # bf16 epilogue for bf16 inputs
    o_ref[...] = _leaky_relu(y + x)          # residual + second LeakyReLU


def reslayer_tiled_kernel(x_ref, xres_ref, w_ref, b_ref, o_ref, acc_ref):
    # Large-C fallback: (M, N, K) grid, K last ("arbitrary"), f32 accumulator.
    # x_ref:    (tm, tk)  matmul LHS slice        index (i, k)
    # xres_ref: (tm, tn)  residual slice of x     index (i, j)
    # w_ref:    (tk, tn)  weight tile [in, out]   index (k, j)
    # b_ref:    (1, tn)   f32 bias tile           index (0, j)
    k = pl.program_id(2)

    @pl.when(k == 0)
    def _():
        acc_ref[...] = jnp.zeros_like(acc_ref)

    acc_ref[...] += jnp.dot(x_ref[...], w_ref[...],
                            preferred_element_type=jnp.float32)

    @pl.when(k == pl.num_programs(2) - 1)
    def _():
        y = _leaky_relu(acc_ref[...] + b_ref[...])
        y = y.astype(o_ref.dtype)
        o_ref[...] = _leaky_relu(y + xres_ref[...])


# ----------------------------------------------------------------------------
# wrappers
# ----------------------------------------------------------------------------
def prepare_reslayer_params(weight, bias, dtype=jnp.float32):
    """Hoist per-call weight work: torch layout [out,in] -> [in,out] in compute
    dtype, bias -> f32 row.  Call once at model init and reuse."""
    C = weight.shape[0]
    w_t = jnp.asarray(weight).T.astype(dtype)
    b = jnp.asarray(bias).astype(jnp.float32).reshape(1, C)
    return w_t, b


def _res_layer_resident(x2, w_t, b, tm, vmem_limit):
    M, C = x2.shape
    dsize = jnp.dtype(x2.dtype).itemsize
    grid_m = pl.cdiv(M, tm)
    cost = pl.CostEstimate(
        flops=2 * M * C * C,
        transcendentals=0,
        bytes_accessed=2 * M * C * dsize + C * C * dsize + 4 * C,
    )
    return pl.pallas_call(
        reslayer_kernel,
        out_shape=jax.ShapeDtypeStruct((M, C), x2.dtype),
        grid_spec=pltpu.PrefetchScalarGridSpec(
            num_scalar_prefetch=0,
            grid=(grid_m,),
            in_specs=[
                pl.BlockSpec((tm, C), lambda i: (i, 0)),            # x row tile
                pl.BlockSpec((C, C), lambda i: (0, 0),              # weight (resident,
                             pipeline_mode=pl.Buffered(1)),         #  single-buffered)
                pl.BlockSpec((1, C), lambda i: (0, 0),              # bias
                             pipeline_mode=pl.Buffered(1)),
            ],
            out_specs=pl.BlockSpec((tm, C), lambda i: (i, 0)),
        ),
        compiler_params=pltpu.CompilerParams(
            dimension_semantics=("parallel",),
            vmem_limit_bytes=int(vmem_limit),
        ),
        cost_estimate=cost,
    )(x2, w_t, b)


def _res_layer_tiled(x2, w_t, b, row_align, vmem_limit):
    M, C = x2.shape
    dtype = x2.dtype
    dsize = jnp.dtype(dtype).itemsize

    # Channel zero-padding to a 128 multiple is exact: padded in-channels add 0
    # to the matmul; padded out-channels get 0 weight + 0 bias and stay 0
    # through both LeakyReLUs and the (zero) residual.
    Cp = _round_up(C, 128)
    x_p = x2 if Cp == C else jnp.pad(x2, ((0, 0), (0, Cp - C)))
    w_p = w_t if Cp == C else jnp.pad(w_t, ((0, Cp - C), (0, Cp - C)))
    b_p = b if Cp == C else jnp.pad(b, ((0, 0), (0, Cp - C)))

    tn = tk = _largest_divisor_tile(Cp)
    tm = max(row_align, min(256, _round_up(M, row_align)))
    tm = max(row_align, (tm // row_align) * row_align)

    grid = (pl.cdiv(M, tm), Cp // tn, Cp // tk)
    cost = pl.CostEstimate(
        flops=2 * M * Cp * Cp,
        transcendentals=0,
        bytes_accessed=2 * M * Cp * dsize + Cp * Cp * dsize + 4 * Cp,
    )
    out = pl.pallas_call(
        reslayer_tiled_kernel,
        out_shape=jax.ShapeDtypeStruct((M, Cp), dtype),
        grid_spec=pltpu.PrefetchScalarGridSpec(
            num_scalar_prefetch=0,
            grid=grid,
            in_specs=[
                pl.BlockSpec((tm, tk), lambda i, j, k: (i, k)),     # matmul LHS
                pl.BlockSpec((tm, tn), lambda i, j, k: (i, j)),     # residual slice
                pl.BlockSpec((tk, tn), lambda i, j, k: (k, j)),     # weight tile
                pl.BlockSpec((1, tn), lambda i, j, k: (0, j)),      # bias tile
            ],
            out_specs=pl.BlockSpec((tm, tn), lambda i, j, k: (i, j)),
            scratch_shapes=[pltpu.VMEM((tm, tn), jnp.float32)],
        ),
        compiler_params=pltpu.CompilerParams(
            dimension_semantics=("parallel", "parallel", "arbitrary"),
            vmem_limit_bytes=int(vmem_limit),
        ),
        cost_estimate=cost,
    )(x_p, x_p, w_p, b_p)
    return out if Cp == C else out[:, :C]


def res_layer_apply(x, w_t, b, *, force_tiled=False):
    """Apply ResLayer with prepared params (w_t: [in,out], b: (1,C) f32)."""
    orig_shape = x.shape
    C = orig_shape[-1]
    x2 = x.reshape(-1, C)
    M = x2.shape[0]
    dsize = jnp.dtype(x.dtype).itemsize
    row_align = 16 if x.dtype == jnp.bfloat16 else 8

    vmem_cap = _tpu_vmem_bytes()
    # generation-aware scoped-VMEM request: ~7/8 of physical, <= 100 MiB
    # (=> ~56 MiB on v7x's 64 MiB, 100 MiB on v5e/v6e's 128 MiB)
    vmem_limit = min(vmem_cap * 7 // 8, 100 * 1024 * 1024)
    # 64-MiB-VMEM parts (v7x) have 2 TensorCores sharing the "parallel" grid axis
    n_cores = 2 if vmem_cap <= 64 * 1024 * 1024 else 1

    tm = None if force_tiled else _choose_tm(M, C, dsize, vmem_limit,
                                             row_align, n_cores)
    if tm is not None:
        out2 = _res_layer_resident(x2, w_t, b, tm, vmem_limit)
    else:
        out2 = _res_layer_tiled(x2, w_t, b, row_align, vmem_limit)
    return out2.reshape(orig_shape)


def res_layer(x, weight, bias, *, force_tiled=False):
    """Convenience wrapper taking torch-layout params (weight [out,in], bias [out]).
    For repeated calls, use prepare_reslayer_params() once + res_layer_apply()."""
    w_t, b = prepare_reslayer_params(weight, bias, dtype=x.dtype)
    return res_layer_apply(x, w_t, b, force_tiled=force_tiled)


# ----------------------------------------------------------------------------
# reference + test
# ----------------------------------------------------------------------------
def reference(x, weight, bias):
    y = jnp.einsum("...i,oi->...o", x, weight,
                   precision=jax.lax.Precision.HIGHEST) + bias
    y = jnp.where(y >= 0, y, NEG_SLOPE * y)
    z = y + x
    return jnp.where(z >= 0, z, NEG_SLOPE * z)


if __name__ == "__main__":
    key = jax.random.PRNGKey(0)
    kx, kw, kb, kx2, kw2, kb2 = jax.random.split(key, 6)

    # ---- test 1: fast (weight-resident) path, small non-128-multiple C ------
    B, T, C = 2, 8, 32
    x = jax.random.normal(kx, (B, T, C), dtype=jnp.float32)
    bound = 1.0 / (C ** 0.5)
    weight = jax.random.uniform(kw, (C, C), jnp.float32, -bound, bound)  # [out, in]
    bias = jax.random.uniform(kb, (C,), jnp.float32, -bound, bound)

    out = jax.block_until_ready(res_layer(x, weight, bias))
    ref = reference(x, weight, bias)
    assert out.shape == x.shape
    assert jnp.allclose(out, ref, atol=1e-5, rtol=1e-5), "fast path mismatch"

    # ---- test 2: K/N-tiled large-C fallback (forced at a small shape) -------
    C2 = 256
    x2 = jax.random.normal(kx2, (B, T, C2), dtype=jnp.float32)
    bound2 = 1.0 / (C2 ** 0.5)
    weight2 = jax.random.uniform(kw2, (C2, C2), jnp.float32, -bound2, bound2)
    bias2 = jax.random.uniform(kb2, (C2,), jnp.float32, -bound2, bound2)

    out2 = jax.block_until_ready(res_layer(x2, weight2, bias2, force_tiled=True))
    ref2 = reference(x2, weight2, bias2)
    assert out2.shape == x2.shape
    assert jnp.allclose(out2, ref2, atol=1e-4, rtol=1e-4), "tiled path mismatch"

    print("KERNEL_OK")
</pallas_src>

<mosaic_0001>
module attributes {stable_mosaic.version = 11 : i64} {
  func.func @reslayer_kernel(%arg0: i32, %arg1: memref<8x32xf32, #tpu.memory_space<vmem>>, %arg2: memref<32x32xf32, #tpu.memory_space<vmem>>, %arg3: memref<1x32xf32, #tpu.memory_space<vmem>>, %arg4: memref<8x32xf32, #tpu.memory_space<vmem>>) attributes {dimension_semantics = [#tpu.dimension_semantics<parallel>], iteration_bounds = array<i64: 2>, scalar_prefetch = 0 : i64, scratch_operands = 0 : i64, tpu.core_type = #tpu.core_type<tc>, window_params = [{transform_indices = @transform_0, window_bounds = array<i64: 8, 32>}, {pipeline_mode = #tpu.pipeline_mode<synchronous>, transform_indices = @transform_1, window_bounds = array<i64: 32, 32>}, {pipeline_mode = #tpu.pipeline_mode<synchronous>, transform_indices = @transform_2, window_bounds = array<i64: 1, 32>}, {transform_indices = @transform_3, window_bounds = array<i64: 8, 32>}]} {
    %c0 = arith.constant 0 : index
    %c0_0 = arith.constant 0 : index
    %0 = vector.load %arg1[%c0, %c0_0] : memref<8x32xf32, #tpu.memory_space<vmem>>, vector<8x32xf32>
    %c0_1 = arith.constant 0 : index
    %c0_2 = arith.constant 0 : index
    %1 = vector.load %arg2[%c0_1, %c0_2] : memref<32x32xf32, #tpu.memory_space<vmem>>, vector<32x32xf32>
    %cst = arith.constant dense<0.000000e+00> : vector<8x32xf32>
    %2 = tpu.matmul %0, %1, %cst {dimension_numbers = #tpu.dot_dimension_numbers<[1], [0], [0], [1], [0, 0, 1, 1], [], []>} : vector<8x32xf32>, vector<32x32xf32>, vector<8x32xf32> -> vector<8x32xf32>
    %c0_3 = arith.constant 0 : index
    %c0_4 = arith.constant 0 : index
    %3 = vector.load %arg3[%c0_3, %c0_4] : memref<1x32xf32, #tpu.memory_space<vmem>>, vector<1x32xf32>
    %4 = vector.broadcast %3 : vector<1x32xf32> to vector<8x32xf32>
    %5 = arith.addf %2, %4 : vector<8x32xf32>
    %cst_5 = arith.constant 0.00999999977 : f32
    %6 = vector.broadcast %cst_5 : f32 to vector<8x32xf32>
    %7 = arith.mulf %6, %5 : vector<8x32xf32>
    %8 = arith.maximumf %5, %7 : vector<8x32xf32>
    %9 = arith.addf %8, %0 : vector<8x32xf32>
    %cst_6 = arith.constant 0.00999999977 : f32
    %10 = vector.broadcast %cst_6 : f32 to vector<8x32xf32>
    %11 = arith.mulf %10, %9 : vector<8x32xf32>
    %12 = arith.maximumf %9, %11 : vector<8x32xf32>
    %c0_7 = arith.constant 0 : index
    %c0_8 = arith.constant 0 : index
    %13 = vector.load %arg4[%c0_7, %c0_8] : memref<8x32xf32, #tpu.memory_space<vmem>>, vector<8x32xf32>
    tpu.vector_store %arg4[%c0_7, %c0_8], %12 {strides = array<i32>} : memref<8x32xf32, #tpu.memory_space<vmem>>, vector<8x32xf32>,
    return
  }
  func.func @transform_0(%arg0: i32) -> (i32, i32) {
    %c0_i32 = arith.constant 0 : i32
    %c0_i32_0 = arith.constant 0 : i32
    return %arg0, %c0_i32 : i32, i32
  }
  func.func @transform_1(%arg0: i32) -> (i32, i32) {
    %c0_i32 = arith.constant 0 : i32
    %c0_i32_0 = arith.constant 0 : i32
    %c0_i32_1 = arith.constant 0 : i32
    return %c0_i32, %c0_i32_0 : i32, i32
  }
  func.func @transform_2(%arg0: i32) -> (i32, i32) {
    %c0_i32 = arith.constant 0 : i32
    %c0_i32_0 = arith.constant 0 : i32
    %c0_i32_1 = arith.constant 0 : i32
    return %c0_i32, %c0_i32_0 : i32, i32
  }
  func.func @transform_3(%arg0: i32) -> (i32, i32) {
    %c0_i32 = arith.constant 0 : i32
    %c0_i32_0 = arith.constant 0 : i32
    return %arg0, %c0_i32 : i32, i32
  }
}

</mosaic_0001>

<bundles_post_ra>
// kernel: tpu_custom_call.1
= control target key start
LH: loop header
LB: loop body
LE: loop exit
PB: predicated region body
PF: predicated region fallthrough
CT: control target
= control target key end

     0   :  { %8 = vsyncpa [#allocation3], 0  ;;  %s711_s0 = inlined_call_operand.hbm [shape: f32[16,32], index: 0, kind: input, shape index: {}]   ;;  %s712_s1 = inlined_call_operand.hbm [shape: f32[32,32], index: 1, kind: input, shape index: {}]   ;;  %s713_s2 = inlined_call_operand.vmem [shape: f32[1,32], index: 2, kind: input, shape index: {}]   ;;  %s714_s3 = inlined_call_operand.hbm [shape: f32[16,32], index: 3, kind: output, shape index: {}]  }
   0x1   :  { %10 = vsyncpa [#allocation3 + $0x1], 0 }
   0x2   :  { %11 = vsyncpa [#allocation6], 0 }
   0x3   :  { %12 = vsyncpa [#allocation4], 0 }
   0x4   :  { %14 = vsyncpa [#allocation4 + $0x1], 0  ;;  %s570_s12 = smov 0   ;;  %s572_s13 = smov 0  }
   0x5   :  { %s574_s14 = smov 0   ;;  %s576_s15 = smov 0  }
   0x6 LB: > { %s130_s18 = sshll.u32 %s712_s1, 4  ;;  %s594_s19 = sadd.s32 4294967295, %s545_s15   ;;  %s545_s15 = sphi %s576_s15, %s724_s15   ;;  %s541_s14 = sphi %s574_s14, %s723_s14   ;;  %s537_s13 = sphi %s572_s13, %s722_s13   ;;  %s533_s12 = sphi %s570_s12, %s721_s12   ;;  %s131_s18 = int_to_ptr.hbm [resolvable:$true] %s130_s18 }
   0x7   : > { %p341_p0 = scmp.ge.s32.totalorder %s545_s15, 1  ;;  %p41_p1 = scmp.eq.s32.totalorder %s594_s19, 0 }
   0x8   : > { %p119_p2 = scmp.lt.s32.totalorder %s545_s15, 3  ;;  %s547_s21 = smov [#allocation5]  }
   0x9   : > { %s132_s22 = sshll.u32 %s547_s21, 4  ;;  %s548_s23 = smov 128   ;;  %s133_s22 = int_to_ptr.vmem [resolvable:$true] %s132_s22 }
   0xa   : > { %p599_p3 = pnand %p341_p0, %p119_p2  ;;  %s549_s24 = smov 8  }
   0xb   : > { %s340_s25 = sadd.s32 4294967294, %s545_s15   ;;  %s610_s26 = sadd.s32 1, %s545_s15  }
   0xc   : > { %p363_p4 = pneg %p599_p3  ;;  %s27_s27 = sadd.s32 1, %s541_s14 }
   0xd   : > { %s24_s28 = ssub.s32 %s545_s15, %s610_s26  ;;  %p34_p7 = scmp.ne.s32.totalorder %s541_s14, %s537_s13 }
   0xe   : > { %p364_p6 = pnand %p363_p4, %p41_p1  ;;  %p25_p8 = scmp.eq.s32.totalorder %s24_s28, 0 }
   0xf   : > { %p35_p9 = scmp.eq.s32.totalorder %s545_s15, 0  ;;  %p40_p10 = scmp.ne.s32.totalorder %s537_s13, %s533_s12 }
  0x10   : > { %366 = dma.hbm_to_vmem [thread:$0]  (!%p364_p6), %s131_s18, 512, %s133_s22, [#allocation6], %s548_s23, %s548_s23, %s549_s24  }
  0x11   : > { %p106_p11 = scmp.eq.s32.totalorder %s594_s19, 1  ;;  %p626_p12 = por %p41_p1, %p40_p10 }
  0x12   : > { %s622_s29 = scalar_select %p25_p8, %s541_s14, %s27_s27  }
  0x13   : > { %p630_p13 = por %p106_p11, %p34_p7  ;;  %p112_p0 = scmp.eq.s32.totalorder %s340_s25, 1 }
  0x14   : > { %p36_p2 = por %p35_p9, %p34_p7  ;;  %s149_s5 = sand.u32 1, %s541_s14  }
  0x15   : > { %p635_p4 = por %p112_p0, %p40_p10  ;;  %p376_p6 = scmp.lt.s32.totalorder %s545_s15, 2 }
  0x16   : > { %s344_s7 = sshll.u32 %s149_s5, 3  ;;  %s345_s8 = sshll.u32 %s545_s15, 3 }
  0x17   : > { %s157_s11 = scalar_lea.hbm %s711_s0, %s345_s8  ;;  %s153_s17 = scalar_lea.vmem [#allocation2], %s344_s7 }
  0x18   : > { %s159_s16 = sshll.u32 %s157_s11, 4  ;;  %s161_s18 = sshll.u32 %s153_s17, 4  ;;  %s160_s16 = int_to_ptr.hbm [resolvable:$true] %s159_s16  ;;  %s162_s18 = int_to_ptr.vmem [resolvable:$true] %s161_s18 }
  0x19   : > { %p644_p8 = pnand %p376_p6, %p36_p2  ;;  %s150_s22 = scalar_lea.sflag [#allocation3], %s149_s5 }
  0x1a   : > { %s445_s23 = sshra.s32 %s160_s16, 4  ;;  %s452_s28 = scalar_lea.hbm %s711_s0, 16  ;;  %s446_s23 = int_to_ptr.hbm [resolvable:$true] %s445_s23 }
  0x1b   : > { %s447_s24 = scalar_lea.hbm %s446_s23, 8  ;;  %p449_p9 = pneg %p644_p8 }
  0x1c   : > { %p448_p7 = scmp.ne.s32.totalorder %s446_s23, %s447_s24  ;;  %p453_p0 = scmp.lt.s32.totalorder %s446_s23, %s711_s0 }
  0x1d   : > { %p454_p2 = scmp.lt.s32.totalorder %s452_s28, %s447_s24 }
  0x1e   : > { %p450_p10 = pnand %p449_p9, %p448_p7 }
  0x1f   : > { %p455_p6 = por %p454_p2, %p453_p0 }
  0x20   : > { %p451_p11 = pneg %p450_p10 }
  0x22   : > { %p456_p5 = pnand %p455_p6, %p451_p11 }
  0x24   : > { %459 = shalt.err (!%p456_p5)
}
  0x25   : > { %370 = dma.hbm_to_vmem [thread:$0]  (!%p644_p8), %s160_s16, 128, %s162_s18, %s150_s22  }
  0x26   : > { %170 = sbr.rel (%p599_p3) target bundleno = 195 (0xc3), region = 32  ;;  %s661_s5 = sand.u32 (!%p599_p3), 1, %s537_s13  }
  0x27   : > { %s347_s9 = sshll.u32 (!%p599_p3), %s661_s5, 3  ;;  %s173_s10 = scalar_lea.sflag (!%p599_p3), [#allocation3], %s661_s5 }
  0x28   : > { %s176_s11 = scalar_lea.vmem (!%p599_p3), [#allocation2], %s347_s9 }
  0x2b   : > { %520 = dma.done.wait (%p626_p12), %s173_s10, 128  }
  0x2c   : > { %522 = vsyncadd (%p626_p12), %s173_s10, 4294967168 }
  0x2d   : > { %524 = dma.done.wait (%p41_p1), [#allocation6], 512  }
  0x2e   : > { %526 = vsyncadd (%p41_p1), [#allocation6], 4294966784  ;;  %v209_v0 = vld [vmem:[#allocation5 + $0x18] sm:$0xff]  ;;  %v208_v1 = vld [vmem:[#allocation5 + $0x10] sm:$0xff]  ;;  %vm214_vm0 = vcmask 261120   ;;  %s352_s16 = sshll.u32 %s594_s19, 3 }
  0x2f   : > { %230 = vmatpush.msra.mxu0 %v209_v0  ;;  %v207_v2 = vld [vmem:[#allocation5 + $0x8] sm:$0xff]  ;;  %v206_v3 = vld [vmem:[#allocation5] sm:$0xff]  ;;  %v205_v4 = vld [vmem:[%s176_s11] sm:$0xff]  ;;  %s255_s21 = scalar_lea.hbm %s714_s3, %s352_s16  ;;  %s204_s22 = scalar_lea.vmem [#allocation7], %s347_s9 }
  0x30   : > { %v414_v5 = vld [vmem:[%s713_s2] ss:$0 sm:$0xff]  ;;  %s257_s23 = sshll.u32 %s204_s22, 4  ;;  %s259_s24 = sshll.u32 %s255_s21, 4  ;;  %s258_s23 = int_to_ptr.vmem [resolvable:$true] %s257_s23  ;;  %s260_s24 = int_to_ptr.hbm [resolvable:$true] %s259_s24 }
  0x31   : > { %231 = vmatpush.msra.mxu0 %v208_v1  ;;  %s245_s25 = scalar_lea.sflag [#allocation4], %s661_s5  ;;  %s489_s27 = sshra.s32 %s260_s24, 4  ;;  %s490_s27 = int_to_ptr.hbm [resolvable:$true] %s489_s27 }
  0x32   : > { %s491_s19 = scalar_lea.hbm %s490_s27, 8  ;;  %s495_s8 = scalar_lea.hbm %s714_s3, 16 }
  0x33   : > { %232 = vmatpush.msra.mxu0 %v207_v2  ;;  %p492_p1 = scmp.ne.s32.totalorder %s490_s27, %s491_s19  ;;  %p496_p12 = scmp.lt.s32.totalorder %s490_s27, %s714_s3 }
  0x34   : > { %p497_p8 = scmp.lt.s32.totalorder %s495_s8, %s491_s19 }
  0x35   : > { %233 = vmatpush.msra.mxu0 %v206_v3  ;;  %p493_p3 = pnand %p492_p1, %p630_p13 }
  0x36   : > { %350 = vmatmul.msk.f32.vlgmr.msra.gmra.mxu0 %vm214_vm0, %v205_v4  ;;  %p498_p7 = por %p497_p8, %p496_p12 }
  0x37   : > { %p494_p5 = pneg %p493_p3 }
  0x39   : > { %p499_p9 = pnand %p498_p7, %p494_p5 }
  0xb3   : > { %v235_v6 = vpop.f32.mrf.mxu0 }
  0xb4   : > { %v236_v7 = vadd.f32 %v414_v5, %v235_v6 }
  0xb6   : > { %v238_v8 = vmul.f32 0.01, %v236_v7 }
  0xb8   : > { %v239_v9 = vmax.f32 %v236_v7, %v238_v8 }
  0xba   : > { %v240_v10 = vadd.f32 %v239_v9, %v205_v4 }
  0xbc   : > { %v241_v11 = vmul.f32 0.01, %v240_v10 }
  0xbe   : > { %v242_v12 = vmax.f32 %v240_v10, %v241_v11 }
  0xc0   : > { %243 = vst.msk [vmem:[%s204_s22] sm:$0xff] %vm214_vm0, %v242_v12 }
  0xc1   : > { %502 = shalt.err (!%p499_p9)
}
  0xc2   : > { %361 = dma.vmem_to_hbm [thread:$0]  (%p630_p13), %s258_s23, 128, %s260_s24, %s245_s25  }
  0xc3 PF: > { %s271_s5 = sand.u32 1, %s533_s12   ;;  %p720_p10 = scmp.ge.s32.totalorder %s545_s15, 2 }
  0xc4   : > { %s272_s11 = scalar_lea.sflag [#allocation4], %s271_s5 }
  0xc5   : > { %p372_p11 = pnand %p720_p10, %p635_p4 }
  0xc7   : > { %p373_p0 = pneg %p372_p11 }
  0xc9   : > { %528 = dma.done.wait (%p373_p0), %s272_s11, 128  }
  0xca   : > { %530 = vsyncadd (%p373_p0), %s272_s11, 4294967168  ;;  %p17_p2 = scmp.ge.s32.totalorder %s610_s26, 4   ;;  %s721_s12 = smov %s537_s13 }
  0xcb   : > { %s722_s13 = smov %s541_s14  ;;  %s723_s14 = smov %s622_s29 }
  0xcc   : > { %s724_s15 = smov %s610_s26  ;;  %19 = sbr.rel (!%p17_p2) target bundleno = 6 (0x6), region = 81 }
  0xd1   :  { %278 = vsyncpa [#allocation3], 1 }
  0xd2   :  { %280 = vsyncpa [#allocation3 + $0x1], 1 }
  0xd3   :  { %281 = vsyncpa [#allocation6], 1 }
  0xd4   :  { %282 = vsyncpa [#allocation4], 1 }
  0xd5   :  { %284 = vsyncpa [#allocation4 + $0x1], 1 }

</bundles_post_ra>
